<compile_context>
chip_gen: v7x
topology: tpu7x:2x2x1
jax: 0.10.0
libtpu: 0.0.40
codegen_flags: <defaults>
</compile_context>

<pallas_src>
import math
import random

import jax
import jax.numpy as jnp
import numpy as np
from jax.experimental import pallas as pl
from jax.experimental.pallas import tpu as pltpu

# ---------------- static network configuration ----------------
NET_DEPTH = 5
NET_ARCH = [8] * 53
LAYER_TC = [4, 4, 0, 3, 4]          # layer_tc[0] must equal layer_tc[1] for shapes to line up
ALL_PATH_NUM = [8, 8, 8, 16, 20]    # all_path_num[i] <= width(feat_dict[i-2]) for i >= 2
BATCH = 8
IN_DIM = 784
OUT_DIM = 10

_rng = random.Random(0)             # deterministic replacement for random.sample in add_link()
LINK_DICT = [
    _rng.sample(list(range(ALL_PATH_NUM[i])), LAYER_TC[i]) for i in range(NET_DEPTH)
]

# per-layer (in_features, out_features), mirroring the PyTorch __init__
LAYER_SHAPES = [(IN_DIM, NET_ARCH[0] + LAYER_TC[0])]
for i in range(NET_DEPTH - 2):
    LAYER_SHAPES.append((NET_ARCH[i + 1] + LAYER_TC[i + 1], NET_ARCH[i + 1]))
LAYER_SHAPES.append((NET_ARCH[NET_DEPTH - 1] + LAYER_TC[NET_DEPTH - 1], OUT_DIM))

# history scratch layout: [out0 | out1 | ... | out_{D-2} | const 1]
HIST_OFF = []
_o = 0
for k in range(NET_DEPTH - 1):
    HIST_OFF.append(_o)
    _o += LAYER_SHAPES[k][1]
ONE_COL = _o                         # constant-one column (carries the folded biases)
W_HIST = _o + 1                      # 37 for the default config

# packed parameter slab: one (W_HIST, SLAB_W) band per layer 1..D-1, band starts at lane 0
SLAB_W = 16                          # max out_features of layers 1..D-1 (10) padded up

# layers whose *input* gets an ELU in the reference forward
ELU_IN = {layer: (2 <= layer <= NET_DEPTH - 2) for layer in range(1, NET_DEPTH)}


# ---------------- host-side folding of selection + bias into packed params ----------------
def _feat_cols(k):
    """hist columns of feat_dict[k], in the reference torch.cat order."""
    if k == 0:
        return list(range(HIST_OFF[0], HIST_OFF[0] + LAYER_SHAPES[0][1]))
    return list(range(HIST_OFF[k], HIST_OFF[k] + LAYER_SHAPES[k][1])) + _feat_cols(k - 1)


def _in_cols(layer):
    """hist columns feeding layer `layer` (1..D-1), in the reference concat order."""
    if layer == 1:
        return list(range(HIST_OFF[0], HIST_OFF[0] + LAYER_SHAPES[0][1]))
    layer_idx = layer - 2
    cols = list(range(HIST_OFF[layer_idx + 1],
                      HIST_OFF[layer_idx + 1] + LAYER_SHAPES[layer_idx + 1][1]))
    if LAYER_TC[layer] > 0:
        fc = _feat_cols(layer_idx)
        cols += [fc[j] for j in LINK_DICT[layer]]
    return cols


def build_param_slab(W, b):
    """Fold bias + static skip-link selection of layers 1..D-1 into a (D-1, W_HIST, SLAB_W)
    slab (each band starts at lane 0; unused lanes / rows stay zero).

    Valid because each selection matrix has one-hot columns, so it commutes with ELU:
    ELU(hist @ S) @ W == ELU(hist) @ (S @ W).  The bias rides on the constant-one hist
    column; this relies on ELU(1) == 1 exactly (true for ELU; would break for e.g. GELU)."""
    slab = np.zeros((NET_DEPTH - 1, W_HIST, SLAB_W), np.float32)
    for layer in range(1, NET_DEPTH):
        cols = _in_cols(layer)
        assert len(cols) == LAYER_SHAPES[layer][0]
        # each layer may only read bands that are already written when it runs
        limit = HIST_OFF[layer] if layer < NET_DEPTH - 1 else ONE_COL
        assert all(hc < limit for hc in cols)
        out_f = LAYER_SHAPES[layer][1]
        Wl = np.asarray(W[layer], np.float32)            # (out_f, in_f)
        slab[layer - 1, ONE_COL, :out_f] += np.asarray(b[layer], np.float32)
        for p, hc in enumerate(cols):
            slab[layer - 1, hc, :out_f] += Wl[:, p]
    return jnp.asarray(slab)


def build_layer0(W0):
    """Layer-0 weight, lane-dense (out, 784) bf16 (consumed with an NT contraction)."""
    return jnp.asarray(np.asarray(W0, np.float32), jnp.bfloat16)


def build_bias0(b0):
    """Layer-0 bias as a separate resident (1, out0) f32 operand (exact, not bf16-rounded)."""
    return jnp.asarray(np.asarray(b0, np.float32)).reshape(1, -1)


# ---------------- Pallas kernel (whole forward pass, one batch tile per grid step) ---------
def _elu(v):
    return jnp.where(v > 0, v, jnp.exp(jnp.minimum(v, 0.0)) - 1.0)


def _forward_kernel(x_ref, w0_ref, b0_ref, slab_ref, o_ref, hraw_ref, helu_ref):
    # init both history scratches: zeros everywhere, constant 1 in ONE_COL (carries the
    # folded biases; ELU(1) == 1 so the same column is valid in the pre-activated hist).
    col = jax.lax.broadcasted_iota(jnp.int32, hraw_ref.shape, 1)
    ones_init = jnp.where(col == ONE_COL, 1.0, 0.0).astype(jnp.float32)
    hraw_ref[...] = ones_init
    helu_ref[...] = ones_init

    # layer 0: lane-dense NT matmul over the 784 pixel lanes (bf16 MXU, f32 acc) + f32 bias.
    xb = x_ref[...]
    if xb.dtype != jnp.bfloat16:
        xb = xb.astype(jnp.bfloat16)
    pre0 = jax.lax.dot_general(
        xb, w0_ref[...],
        dimension_numbers=(((1,), (1,)), ((), ())),
        preferred_element_type=jnp.float32) + b0_ref[...]
    out0 = _elu(pre0)                                   # reference out0 is already ELU'd
    o0 = LAYER_SHAPES[0][1]
    hraw_ref[:, HIST_OFF[0]:HIST_OFF[0] + o0] = out0
    # layers 2..D-2 re-ELU the (already activated) gathered columns — matches the reference.
    helu_ref[:, HIST_OFF[0]:HIST_OFF[0] + o0] = _elu(out0)

    # layers 1 .. D-1: one small MXU matmul each against that layer's zero-padded slab band.
    for layer in range(1, NET_DEPTH):
        h = helu_ref[...] if ELU_IN[layer] else hraw_ref[...]
        res = jnp.dot(h, slab_ref[layer - 1], preferred_element_type=jnp.float32)
        out_f = LAYER_SHAPES[layer][1]
        if layer < NET_DEPTH - 1:
            band = res[:, :out_f]
            hraw_ref[:, HIST_OFF[layer]:HIST_OFF[layer] + out_f] = band
            if layer < NET_DEPTH - 2:       # ELU'd copy only consumed by layers 2..D-2
                helu_ref[:, HIST_OFF[layer]:HIST_OFF[layer] + out_f] = _elu(band)
        else:
            o_ref[...] = res[:, :OUT_DIM].astype(o_ref.dtype)


def _pick_tile_b(B, cap=2048):
    """Row tile: single step for small batches, exactly 2 steps for mid-size batches
    (so v7x's two TensorCores both get work), <= `cap` rows per step for huge batches
    (keeps double/triple-buffered x well inside scoped VMEM on all generations)."""
    if B <= 256:
        return B
    if B <= cap:
        half = B // 2
        if B % 2 == 0 and half % 8 == 0:
            return half
        return B
    t = cap
    while t > 8:
        if t % 8 == 0 and B % t == 0:
            return t
        t -= 8
    return 8


def forward_pallas(x, w0, b0, slab):
    B = x.shape[0]
    tile_b = _pick_tile_b(B)
    assert B % tile_b == 0, "batch must be a multiple of the row tile"
    grid_len = B // tile_b
    out0_f = LAYER_SHAPES[0][1]

    # x is the only operand with real bytes -> deepen its pipeline when the grid is long.
    x_spec_kwargs = {}
    if grid_len >= 3:
        x_spec_kwargs["pipeline_mode"] = pl.Buffered(3)
    x_spec = pl.BlockSpec((tile_b, IN_DIM), lambda i: (i, 0), **x_spec_kwargs)

    x_bytes = int(np.dtype(x.dtype).itemsize)
    cost = pl.CostEstimate(
        flops=int(2 * B * IN_DIM * out0_f + 2 * B * W_HIST * SLAB_W * (NET_DEPTH - 1)),
        transcendentals=int(B * 48),
        bytes_accessed=int(B * IN_DIM * x_bytes + B * OUT_DIM * 4
                           + out0_f * IN_DIM * 2 + out0_f * 4 + int(slab.size) * 4),
    )

    # Output stays (B, OUT_DIM): padding it to 128 lanes would roughly double end-to-end
    # HBM traffic of this x-bandwidth-bound kernel just to avoid a tiny masked store.
    return pl.pallas_call(
        _forward_kernel,
        out_shape=jax.ShapeDtypeStruct((B, OUT_DIM), jnp.float32),
        grid=(grid_len,),
        in_specs=[
            x_spec,
            pl.BlockSpec((out0_f, IN_DIM), lambda i: (0, 0)),                  # resident
            pl.BlockSpec((1, out0_f), lambda i: (0, 0)),                       # resident
            pl.BlockSpec((NET_DEPTH - 1, W_HIST, SLAB_W), lambda i: (0, 0, 0)),  # resident
        ],
        out_specs=pl.BlockSpec((tile_b, OUT_DIM), lambda i: (i, 0)),
        scratch_shapes=[pltpu.VMEM((tile_b, W_HIST), jnp.float32),   # raw history
                        pltpu.VMEM((tile_b, W_HIST), jnp.float32)],  # ELU'd history
        compiler_params=pltpu.CompilerParams(
            dimension_semantics=("parallel",),
            vmem_limit_bytes=48 * 1024 * 1024),
        cost_estimate=cost,
    )(x, w0, b0, slab)


# ---------------- plain-JAX reference (mirrors the PyTorch forward, pure f32) ----------------
def forward_reference(x, W, b):
    out0 = _elu(x @ W[0].T + b[0])
    out1 = out0 @ W[1].T + b[1]
    out_dict = [out0, out1]
    feat_dict = [out0, jnp.concatenate([out1, out0], axis=1)]
    for layer_idx in range(NET_DEPTH - 2):
        layer = layer_idx + 2
        in_features = feat_dict[layer_idx]
        if LAYER_TC[layer] > 0:
            gathered = in_features[:, jnp.asarray(LINK_DICT[layer], jnp.int32)]
            in_tmp = jnp.concatenate([out_dict[layer_idx + 1], gathered], axis=1)
        else:
            in_tmp = out_dict[layer_idx + 1]
        if layer_idx < NET_DEPTH - 3:
            out_tmp = _elu(in_tmp) @ W[layer].T + b[layer]
        else:
            out_tmp = in_tmp @ W[layer].T + b[layer]
        feat_dict.append(jnp.concatenate([out_tmp, feat_dict[layer_idx + 1]], axis=1))
        out_dict.append(out_tmp)
    return out_dict[NET_DEPTH - 1]


# ---------------- deterministic parameter init (PyTorch nn.Linear style) ----------------
def init_params(key):
    W, b = [], []
    for (in_f, out_f) in LAYER_SHAPES:
        key, kw, kb = jax.random.split(key, 3)
        bound = 1.0 / math.sqrt(in_f)
        W.append(jax.random.uniform(kw, (out_f, in_f), jnp.float32, -bound, bound))
        b.append(jax.random.uniform(kb, (out_f,), jnp.float32, -bound, bound))
    return W, b


if __name__ == "__main__":
    key = jax.random.PRNGKey(0)
    key, kx = jax.random.split(key)
    x = jax.random.normal(kx, (BATCH, IN_DIM), jnp.float32)
    W, b = init_params(key)

    x_bf16 = x.astype(jnp.bfloat16)      # unpadded; kernel reads it directly (no host copy)
    w0 = build_layer0(W[0])              # (12, 784) bf16, lane-dense
    b0 = build_bias0(b[0])               # (1, 12)   f32
    slab = build_param_slab(W, b)        # (4, 37, 16) f32, bias + skip selection folded in

    out = forward_pallas(x_bf16, w0, b0, slab)
    out = jax.block_until_ready(out)

    ref = forward_reference(x, W, b)
    assert out.shape == (BATCH, OUT_DIM)
    err = float(jnp.max(jnp.abs(out - ref)))
    # layer-0 operands run on the MXU in bf16 (f32 accumulate, f32 bias); 2e-2 covers that.
    assert jnp.allclose(out, ref, rtol=2e-2, atol=2e-2), f"max abs err {err}"
    print("KERNEL_OK")
</pallas_src>

<mosaic_0001>
module attributes {stable_mosaic.version = 11 : i64} {
  func.func @_forward_kernel(%arg0: i32, %arg1: memref<8x784xbf16, #tpu.memory_space<vmem>>, %arg2: memref<12x784xbf16, #tpu.memory_space<vmem>>, %arg3: memref<1x12xf32, #tpu.memory_space<vmem>>, %arg4: memref<4x37x16xf32, #tpu.memory_space<vmem>>, %arg5: memref<8x10xf32, #tpu.memory_space<vmem>>, %arg6: memref<8x37xf32, #tpu.memory_space<vmem>>, %arg7: memref<8x37xf32, #tpu.memory_space<vmem>>) attributes {dimension_semantics = [#tpu.dimension_semantics<parallel>], iteration_bounds = array<i64: 1>, scalar_prefetch = 0 : i64, scratch_operands = 2 : i64, tpu.core_type = #tpu.core_type<tc>, window_params = [{transform_indices = @transform_0, window_bounds = array<i64: 8, 784>}, {pipeline_mode = #tpu.pipeline_mode<synchronous>, transform_indices = @transform_1, window_bounds = array<i64: 12, 784>}, {pipeline_mode = #tpu.pipeline_mode<synchronous>, transform_indices = @transform_2, window_bounds = array<i64: 1, 12>}, {pipeline_mode = #tpu.pipeline_mode<synchronous>, transform_indices = @transform_3, window_bounds = array<i64: 4, 37, 16>}, {transform_indices = @transform_4, window_bounds = array<i64: 8, 10>}]} {
    %0 = tpu.iota {dimensions = array<i32: 1>} : vector<8x37xi32>
    %c36_i32 = arith.constant 36 : i32
    %1 = vector.broadcast %c36_i32 : i32 to vector<8x37xi32>
    %2 = arith.cmpi eq, %0, %1 : vector<8x37xi32>
    %cst = arith.constant 1.000000e+00 : f32
    %cst_0 = arith.constant 0.000000e+00 : f32
    %3 = vector.broadcast %cst : f32 to vector<8x37xf32>
    %4 = vector.broadcast %cst_0 : f32 to vector<8x37xf32>
    %5 = arith.select %2, %3, %4 : vector<8x37xi1>, vector<8x37xf32>
    %c0 = arith.constant 0 : index
    %c0_1 = arith.constant 0 : index
    %6 = vector.load %arg6[%c0, %c0_1] : memref<8x37xf32, #tpu.memory_space<vmem>>, vector<8x37xf32>
    tpu.vector_store %arg6[%c0, %c0_1], %5 {strides = array<i32>} : memref<8x37xf32, #tpu.memory_space<vmem>>, vector<8x37xf32>,
    %c0_2 = arith.constant 0 : index
    %c0_3 = arith.constant 0 : index
    %7 = vector.load %arg7[%c0_2, %c0_3] : memref<8x37xf32, #tpu.memory_space<vmem>>, vector<8x37xf32>
    tpu.vector_store %arg7[%c0_2, %c0_3], %5 {strides = array<i32>} : memref<8x37xf32, #tpu.memory_space<vmem>>, vector<8x37xf32>,
    %c0_4 = arith.constant 0 : index
    %c0_5 = arith.constant 0 : index
    %8 = vector.load %arg1[%c0_4, %c0_5] : memref<8x784xbf16, #tpu.memory_space<vmem>>, vector<8x784xbf16>
    %c0_6 = arith.constant 0 : index
    %c0_7 = arith.constant 0 : index
    %9 = vector.load %arg2[%c0_6, %c0_7] : memref<12x784xbf16, #tpu.memory_space<vmem>>, vector<12x784xbf16>
    %cst_8 = arith.constant dense<0.000000e+00> : vector<8x12xf32>
    %10 = tpu.matmul %8, %9, %cst_8 {dimension_numbers = #tpu.dot_dimension_numbers<[1], [1], [0], [0], [0, 0, 1, 0], [], []>} : vector<8x784xbf16>, vector<12x784xbf16>, vector<8x12xf32> -> vector<8x12xf32>
    %c0_9 = arith.constant 0 : index
    %c0_10 = arith.constant 0 : index
    %11 = vector.load %arg3[%c0_9, %c0_10] : memref<1x12xf32, #tpu.memory_space<vmem>>, vector<1x12xf32>
    %12 = vector.broadcast %11 : vector<1x12xf32> to vector<8x12xf32>
    %13 = arith.addf %10, %12 : vector<8x12xf32>
    %cst_11 = arith.constant 0.000000e+00 : f32
    %14 = vector.broadcast %cst_11 : f32 to vector<8x12xf32>
    %15 = arith.cmpf ogt, %13, %14 : vector<8x12xf32>
    %cst_12 = arith.constant 0.000000e+00 : f32
    %16 = vector.broadcast %cst_12 : f32 to vector<8x12xf32>
    %17 = arith.minimumf %13, %16 : vector<8x12xf32>
    %18 = math.exp %17 : vector<8x12xf32>
    %cst_13 = arith.constant 1.000000e+00 : f32
    %19 = vector.broadcast %cst_13 : f32 to vector<8x12xf32>
    %20 = arith.subf %18, %19 : vector<8x12xf32>
    %21 = arith.select %15, %13, %20 : vector<8x12xi1>, vector<8x12xf32>
    %c0_14 = arith.constant 0 : index
    %c0_15 = arith.constant 0 : index
    %22 = vector.load %arg6[%c0_14, %c0_15] : memref<8x37xf32, #tpu.memory_space<vmem>>, vector<8x12xf32>
    tpu.vector_store %arg6[%c0_14, %c0_15], %21 {strides = array<i32>} : memref<8x37xf32, #tpu.memory_space<vmem>>, vector<8x12xf32>,
    %cst_16 = arith.constant 0.000000e+00 : f32
    %23 = vector.broadcast %cst_16 : f32 to vector<8x12xf32>
    %24 = arith.cmpf ogt, %21, %23 : vector<8x12xf32>
    %cst_17 = arith.constant 0.000000e+00 : f32
    %25 = vector.broadcast %cst_17 : f32 to vector<8x12xf32>
    %26 = arith.minimumf %21, %25 : vector<8x12xf32>
    %27 = math.exp %26 : vector<8x12xf32>
    %cst_18 = arith.constant 1.000000e+00 : f32
    %28 = vector.broadcast %cst_18 : f32 to vector<8x12xf32>
    %29 = arith.subf %27, %28 : vector<8x12xf32>
    %30 = arith.select %24, %21, %29 : vector<8x12xi1>, vector<8x12xf32>
    %c0_19 = arith.constant 0 : index
    %c0_20 = arith.constant 0 : index
    %31 = vector.load %arg7[%c0_19, %c0_20] : memref<8x37xf32, #tpu.memory_space<vmem>>, vector<8x12xf32>
    tpu.vector_store %arg7[%c0_19, %c0_20], %30 {strides = array<i32>} : memref<8x37xf32, #tpu.memory_space<vmem>>, vector<8x12xf32>,
    %c0_21 = arith.constant 0 : index
    %c0_22 = arith.constant 0 : index
    %32 = vector.load %arg6[%c0_21, %c0_22] : memref<8x37xf32, #tpu.memory_space<vmem>>, vector<8x37xf32>
    %c0_23 = arith.constant 0 : index
    %c0_24 = arith.constant 0 : index
    %c0_25 = arith.constant 0 : index
    %33 = vector.load %arg4[%c0_23, %c0_24, %c0_25] : memref<4x37x16xf32, #tpu.memory_space<vmem>>, vector<1x37x16xf32>
    %34 = vector.shape_cast %33 : vector<1x37x16xf32> to vector<37x16xf32>
    %cst_26 = arith.constant dense<0.000000e+00> : vector<8x16xf32>
    %35 = tpu.matmul %32, %34, %cst_26 {dimension_numbers = #tpu.dot_dimension_numbers<[1], [0], [0], [1], [0, 0, 1, 1], [], []>} : vector<8x37xf32>, vector<37x16xf32>, vector<8x16xf32> -> vector<8x16xf32>
    %36 = vector.extract_strided_slice %35 {offsets = [0, 0], sizes = [8, 8], strides = [1, 1]} : vector<8x16xf32> to vector<8x8xf32>
    %c0_27 = arith.constant 0 : index
    %c12 = arith.constant 12 : index
    %37 = vector.load %arg6[%c0_27, %c12] : memref<8x37xf32, #tpu.memory_space<vmem>>, vector<8x8xf32>
    tpu.vector_store %arg6[%c0_27, %c12], %36 {strides = array<i32>} : memref<8x37xf32, #tpu.memory_space<vmem>>, vector<8x8xf32>,
    %cst_28 = arith.constant 0.000000e+00 : f32
    %38 = vector.broadcast %cst_28 : f32 to vector<8x8xf32>
    %39 = arith.cmpf ogt, %36, %38 : vector<8x8xf32>
    %cst_29 = arith.constant 0.000000e+00 : f32
    %40 = vector.broadcast %cst_29 : f32 to vector<8x8xf32>
    %41 = arith.minimumf %36, %40 : vector<8x8xf32>
    %42 = math.exp %41 : vector<8x8xf32>
    %cst_30 = arith.constant 1.000000e+00 : f32
    %43 = vector.broadcast %cst_30 : f32 to vector<8x8xf32>
    %44 = arith.subf %42, %43 : vector<8x8xf32>
    %45 = arith.select %39, %36, %44 : vector<8x8xi1>, vector<8x8xf32>
    %c0_31 = arith.constant 0 : index
    %c12_32 = arith.constant 12 : index
    %46 = vector.load %arg7[%c0_31, %c12_32] : memref<8x37xf32, #tpu.memory_space<vmem>>, vector<8x8xf32>
    tpu.vector_store %arg7[%c0_31, %c12_32], %45 {strides = array<i32>} : memref<8x37xf32, #tpu.memory_space<vmem>>, vector<8x8xf32>,
    %c0_33 = arith.constant 0 : index
    %c0_34 = arith.constant 0 : index
    %47 = vector.load %arg7[%c0_33, %c0_34] : memref<8x37xf32, #tpu.memory_space<vmem>>, vector<8x37xf32>
    %c1 = arith.constant 1 : index
    %c0_35 = arith.constant 0 : index
    %c0_36 = arith.constant 0 : index
    %48 = vector.load %arg4[%c1, %c0_35, %c0_36] : memref<4x37x16xf32, #tpu.memory_space<vmem>>, vector<1x37x16xf32>
    %49 = vector.shape_cast %48 : vector<1x37x16xf32> to vector<37x16xf32>
    %cst_37 = arith.constant dense<0.000000e+00> : vector<8x16xf32>
    %50 = tpu.matmul %47, %49, %cst_37 {dimension_numbers = #tpu.dot_dimension_numbers<[1], [0], [0], [1], [0, 0, 1, 1], [], []>} : vector<8x37xf32>, vector<37x16xf32>, vector<8x16xf32> -> vector<8x16xf32>
    %51 = vector.extract_strided_slice %50 {offsets = [0, 0], sizes = [8, 8], strides = [1, 1]} : vector<8x16xf32> to vector<8x8xf32>
    %c0_38 = arith.constant 0 : index
    %c20 = arith.constant 20 : index
    %52 = vector.load %arg6[%c0_38, %c20] : memref<8x37xf32, #tpu.memory_space<vmem>>, vector<8x8xf32>
    tpu.vector_store %arg6[%c0_38, %c20], %51 {strides = array<i32>} : memref<8x37xf32, #tpu.memory_space<vmem>>, vector<8x8xf32>,
    %cst_39 = arith.constant 0.000000e+00 : f32
    %53 = vector.broadcast %cst_39 : f32 to vector<8x8xf32>
    %54 = arith.cmpf ogt, %51, %53 : vector<8x8xf32>
    %cst_40 = arith.constant 0.000000e+00 : f32
    %55 = vector.broadcast %cst_40 : f32 to vector<8x8xf32>
    %56 = arith.minimumf %51, %55 : vector<8x8xf32>
    %57 = math.exp %56 : vector<8x8xf32>
    %cst_41 = arith.constant 1.000000e+00 : f32
    %58 = vector.broadcast %cst_41 : f32 to vector<8x8xf32>
    %59 = arith.subf %57, %58 : vector<8x8xf32>
    %60 = arith.select %54, %51, %59 : vector<8x8xi1>, vector<8x8xf32>
    %c0_42 = arith.constant 0 : index
    %c20_43 = arith.constant 20 : index
    %61 = vector.load %arg7[%c0_42, %c20_43] : memref<8x37xf32, #tpu.memory_space<vmem>>, vector<8x8xf32>
    tpu.vector_store %arg7[%c0_42, %c20_43], %60 {strides = array<i32>} : memref<8x37xf32, #tpu.memory_space<vmem>>, vector<8x8xf32>,
    %c0_44 = arith.constant 0 : index
    %c0_45 = arith.constant 0 : index
    %62 = vector.load %arg7[%c0_44, %c0_45] : memref<8x37xf32, #tpu.memory_space<vmem>>, vector<8x37xf32>
    %c2 = arith.constant 2 : index
    %c0_46 = arith.constant 0 : index
    %c0_47 = arith.constant 0 : index
    %63 = vector.load %arg4[%c2, %c0_46, %c0_47] : memref<4x37x16xf32, #tpu.memory_space<vmem>>, vector<1x37x16xf32>
    %64 = vector.shape_cast %63 : vector<1x37x16xf32> to vector<37x16xf32>
    %cst_48 = arith.constant dense<0.000000e+00> : vector<8x16xf32>
    %65 = tpu.matmul %62, %64, %cst_48 {dimension_numbers = #tpu.dot_dimension_numbers<[1], [0], [0], [1], [0, 0, 1, 1], [], []>} : vector<8x37xf32>, vector<37x16xf32>, vector<8x16xf32> -> vector<8x16xf32>
    %66 = vector.extract_strided_slice %65 {offsets = [0, 0], sizes = [8, 8], strides = [1, 1]} : vector<8x16xf32> to vector<8x8xf32>
    %c0_49 = arith.constant 0 : index
    %c28 = arith.constant 28 : index
    %67 = vector.load %arg6[%c0_49, %c28] : memref<8x37xf32, #tpu.memory_space<vmem>>, vector<8x8xf32>
    tpu.vector_store %arg6[%c0_49, %c28], %66 {strides = array<i32>} : memref<8x37xf32, #tpu.memory_space<vmem>>, vector<8x8xf32>,
    %c0_50 = arith.constant 0 : index
    %c0_51 = arith.constant 0 : index
    %68 = vector.load %arg6[%c0_50, %c0_51] : memref<8x37xf32, #tpu.memory_space<vmem>>, vector<8x37xf32>
    %c3 = arith.constant 3 : index
    %c0_52 = arith.constant 0 : index
    %c0_53 = arith.constant 0 : index
    %69 = vector.load %arg4[%c3, %c0_52, %c0_53] : memref<4x37x16xf32, #tpu.memory_space<vmem>>, vector<1x37x16xf32>
    %70 = vector.shape_cast %69 : vector<1x37x16xf32> to vector<37x16xf32>
    %cst_54 = arith.constant dense<0.000000e+00> : vector<8x16xf32>
    %71 = tpu.matmul %68, %70, %cst_54 {dimension_numbers = #tpu.dot_dimension_numbers<[1], [0], [0], [1], [0, 0, 1, 1], [], []>} : vector<8x37xf32>, vector<37x16xf32>, vector<8x16xf32> -> vector<8x16xf32>
    %72 = vector.extract_strided_slice %71 {offsets = [0, 0], sizes = [8, 10], strides = [1, 1]} : vector<8x16xf32> to vector<8x10xf32>
    %c0_55 = arith.constant 0 : index
    %c0_56 = arith.constant 0 : index
    %73 = vector.load %arg5[%c0_55, %c0_56] : memref<8x10xf32, #tpu.memory_space<vmem>>, vector<8x10xf32>
    tpu.vector_store %arg5[%c0_55, %c0_56], %72 {strides = array<i32>} : memref<8x10xf32, #tpu.memory_space<vmem>>, vector<8x10xf32>,
    return
  }
  func.func @transform_0(%arg0: i32) -> (i32, i32) {
    %c0_i32 = arith.constant 0 : i32
    %c0_i32_0 = arith.constant 0 : i32
    return %arg0, %c0_i32 : i32, i32
  }
  func.func @transform_1(%arg0: i32) -> (i32, i32) {
    %c0_i32 = arith.constant 0 : i32
    %c0_i32_0 = arith.constant 0 : i32
    %c0_i32_1 = arith.constant 0 : i32
    return %c0_i32, %c0_i32_0 : i32, i32
  }
  func.func @transform_2(%arg0: i32) -> (i32, i32) {
    %c0_i32 = arith.constant 0 : i32
    %c0_i32_0 = arith.constant 0 : i32
    %c0_i32_1 = arith.constant 0 : i32
    return %c0_i32, %c0_i32_0 : i32, i32
  }
  func.func @transform_3(%arg0: i32) -> (i32, i32, i32) {
    %c0_i32 = arith.constant 0 : i32
    %c0_i32_0 = arith.constant 0 : i32
    %c0_i32_1 = arith.constant 0 : i32
    %c0_i32_2 = arith.constant 0 : i32
    return %c0_i32, %c0_i32_0, %c0_i32_1 : i32, i32, i32
  }
  func.func @transform_4(%arg0: i32) -> (i32, i32) {
    %c0_i32 = arith.constant 0 : i32
    %c0_i32_0 = arith.constant 0 : i32
    return %arg0, %c0_i32 : i32, i32
  }
}

</mosaic_0001>

<bundles_post_ra>
// kernel: tpu_custom_call.1
= control target key start
LH: loop header
LB: loop body
LE: loop exit
PB: predicated region body
PF: predicated region fallthrough
CT: control target
= control target key end

     0   :  { %vm894_vm0 = vmmov 0   ;;  %v895_v9 = vmov 0.0   ;;  %s1068_s0 = inlined_call_operand.vmem [shape: bf16[8,784], index: 0, kind: input, shape index: {}]   ;;  %s1069_s1 = inlined_call_operand.vmem [shape: bf16[12,784], index: 1, kind: input, shape index: {}]   ;;  %s1070_s2 = inlined_call_operand.vmem [shape: f32[1,12], index: 2, kind: input, shape index: {}]   ;;  %s1071_s3 = inlined_call_operand.vmem [shape: f32[4,37,16], index: 3, kind: input, shape index: {}]   ;;  %s1072_s4 = inlined_call_operand.hbm [shape: f32[8,10], index: 4, kind: output, shape index: {}]  }
   0x1   :  { %v845_v0 = vld [vmem:[%s1069_s1 + $0x4] ss:$28 sps:$4 sm:$0x3f]   ;;  %v852_v4 = vld [vmem:[%s1069_s1 + $0xc] ss:$28 sps:$4 sm:$0x3f]   ;;  %759 = vmatprep.mubr.msk.f32.mxu1 %vm894_vm0, %v895_v9 }
   0x2   :  { %v847_v1 = vld [vmem:[%s1069_s1] ss:$28 sps:$4 sm:$0x3f]   ;;  %111 = vmatprep.subr.bf16.mxu0 %v845_v0  ;;  %v27_v5 = vld [vmem:[%s1068_s0 + $0x8] sm:$0xff] }
   0x3   :  { %v26_v2 = vld [vmem:[%s1068_s0] sm:$0xff]  ;;  %112 = vmatpush1.bf16.xpose.msra.mxu0 %v847_v1  ;;  %v678_v8 = vcombine.high %v27_v5, %v27_v5 }
   0x4   :  { %v676_v3 = vcombine.high %v26_v2, %v26_v2  ;;  %151 = vmatprep.subr.bf16.mxu0 %v852_v4  ;;  %v675_v6 = vcombine.low %v26_v2, %v26_v2  ;;  %v850_v7 = vld [vmem:[%s1069_s1 + $0x8] ss:$28 sps:$4 sm:$0x3f]  }
   0x6   :  { %143 = vmatprep.mubr.bf16.mxu0 %v676_v3 }
   0x7   :  { %9 = vsyncpa [#allocation5], 0  ;;  %v857_v10 = vld [vmem:[%s1069_s1 + $0x14] ss:$28 sps:$4 sm:$0x3f]   ;;  %v677_v12 = vcombine.low %v27_v5, %v27_v5  ;;  %vm104_vm1 = vcmask 130048   ;;  %v19_v19 = vlaneseq }
   0x8   :  { %v28_v11 = vld [vmem:[%s1068_s0 + $0x10] sm:$0xff]  ;;  %v861_v18 = vld [vmem:[%s1068_s0 + $0x18] ss:$0 sps:$4 sm:$0xff]   ;;  %v287_v21 = vld [vmem:[%s1071_s3] sm:$0xff]  ;;  %v896_v24 = vmov 0.0|0.0   ;;  %vm23_vm3 = vcmask 302080  }
   0x9   :  { %v855_v13 = vld [vmem:[%s1069_s1 + $0x10] ss:$28 sps:$4 sm:$0x3f]   ;;  %v680_v14 = vcombine.high %v28_v11, %v28_v11  ;;  %v860_v15 = vld [vmem:[%s1069_s1 + $0x18] ss:$28 sps:$4 sm:$0x3f]   ;;  %v679_v16 = vcombine.low %v28_v11, %v28_v11  ;;  %801 = vmatprep.subr.bf16.mxu1 %v896_v24 }
   0xa   :  { %144 = vmatmul.mubr.bf16.vlgmr.msra.gmra.mrb[0].mxu0 %v675_v6  ;;  %v109_v17 = vsel %vm104_vm1, %v860_v15, 0  ;;  %v20_v20 = vand.u32 127, %v19_v19  ;;  %v288_v22 = vld [vmem:[%s1071_s3 + $0x8] sm:$0xff]  ;;  %v289_v26 = vld [vmem:[%s1071_s3 + $0x10] sm:$0xff]  ;;  %v290_v27 = vld [vmem:[%s1071_s3 + $0x18] sm:$0xff]  ;;  %vm295_vm4 = vcmask 1044480  }
   0xb   :  { %152 = vmatpush1.bf16.xpose.msra.mxu0 %v850_v7  ;;  %183 = vmatprep.mubr.bf16.mxu0 %v678_v8  ;;  %v802_v23 = vpack.c.bf16 %v288_v22, %v287_v21  ;;  %v805_v28 = vpack.c.bf16 %v290_v27, %v289_v26  ;;  %v291_v29 = vld [vmem:[%s1071_s3 + $0x20] sm:$0x1f]  ;;  %vm277_vm5 = vcmask 97280   ;;  %v695_v47 = vld [vmem:[%s1071_s3 + $0x28] sm:$0xff]  ;;  %v696_v48 = vld [vmem:[%s1071_s3 + $0x30] sm:$0xff]  ;;  %s897_s24 = smov 12  }
   0xc   :  { %191 = vmatprep.subr.bf16.mxu0 %v857_v10  ;;  %vm21_vm2 = vcmp.eq.s32.totalorder %v20_v20, 36  ;;  %v674_v30 = vld [vmem:[%s1070_s2] ss:$0 sm:$0xff]  ;;  %v808_v49 = vpack.c.bf16 %v696_v48, %v695_v47  ;;  %v697_v54 = vld [vmem:[%s1071_s3 + $0x38] sm:$0xff]  ;;  %v699_v57 = vld [vmem:[%s1071_s3 + $0x48] sm:$0x1f] }
   0xd   :  { %v22_v25 = vsel %vm21_vm2, 1.0, %v895_v9  ;;  %803 = vmatpush3.bf16.msra.mxu1 %v802_v23  ;;  %v698_v55 = vld [vmem:[%s1071_s3 + $0x40] sm:$0xff]  ;;  %vm373_vm9 = vcmask 162912   ;;  %v703_v0 = vld [vmem:[%s1071_s3 + $0x50] sm:$0xff]  ;;  %v704_v1 = vld [vmem:[%s1071_s3 + $0x58] sm:$0xff]  ;;  %s898_s9 = smov 20  }
   0xe   :  { %24 = vst.msk [vmem:[#allocation2] sm:$0xff] %vm23_vm3, %v22_v25  ;;  %25 = vst.msk [vmem:[#allocation3] sm:$0xff] %vm23_vm3, %v22_v25  ;;  %804 = vmatprep.subr.bf16.mxu1 %v896_v24  ;;  %v811_v56 = vpack.c.bf16 %v698_v55, %v697_v54  ;;  %v814_v2 = vpack.c.bf16 %v704_v1, %v703_v0  ;;  %v705_v7 = vld [vmem:[%s1071_s3 + $0x60] sm:$0xff]  ;;  %v706_v8 = vld [vmem:[%s1071_s3 + $0x68] sm:$0xff]  ;;  %vm473_vm11 = vcmask 228512   ;;  %s899_s23 = smov 28  }
   0xf   :  { %v817_v10 = vpack.c.bf16 %v706_v8, %v705_v7  ;;  %v707_v11 = vld [vmem:[%s1071_s3 + $0x70] sm:$0x1f]  ;;  %v711_v19 = vld [vmem:[%s1071_s3 + $0x80] sm:$0xff]  ;;  %v712_v21 = vld [vmem:[%s1071_s3 + $0x88] sm:$0xff]  ;;  %vm573_vm12 = vcmask 294112   ;;  %vm658_vm13 = vcmask 80896  }
  0x10   :  { %v713_v22 = vld [vmem:[%s1071_s3 + $0x90] sm:$0xff]  ;;  %v714_v25 = vld [vmem:[%s1071_s3 + $0x98] sm:$0x1f] }
  0x11   :  { %806 = vmatpush3.bf16.msra.mxu1 %v805_v28  ;;  %v823_v23 = vpack.c.bf16 %v713_v22, %v712_v21 }
  0x12   :  { %757 = vmatprep.subr.mxu1 %v895_v9 }
  0x15   :  { %758 = vmatpush3.msk.msra.mxu1 %vm295_vm4, %v291_v29 }
  0x16   :  { %184 = vmatmul.mubr.bf16.vlgmr.msra.gmra.mrb[0].mxu0 %v677_v12  ;;  %807 = vmatprep.subr.bf16.mxu1 %v896_v24 }
  0x17   :  { %192 = vmatpush1.bf16.xpose.msra.mxu0 %v855_v13  ;;  %223 = vmatprep.mubr.bf16.mxu0 %v680_v14 }
  0x18   :  { %743 = vmatprep.subr.bf16.mxu0 %v895_v9 }
  0x22   :  { %224 = vmatmul.mubr.bf16.vlgmr.msra.gmra.mrb[0].mxu0 %v679_v16 }
  0x23   :  { %744 = vmatpush3.bf16.xpose.msra.mxu0 %v109_v17  ;;  %745 = vmatprep.mubr.msk.bf16.mxu0 %vm894_vm0, %v895_v9 }
  0x2e   :  { %746 = vmatmul.mubr.msk.bf16.vlgmr.msra.gmra.mrb[0].mxu0 %vm104_vm1, %v861_v18  ;;  %v710_v18 = vld [vmem:[%s1071_s3 + $0x78] sm:$0xff] }
  0x2f   :  { %v820_v20 = vpack.c.bf16 %v711_v19, %v710_v18 }
 0x101   :  { %v265_v31 = vpop.f32.mrb[0].mxu0 }
 0x102   :  { %v825_v32 = vadd.f32 %v674_v30, %v265_v31  ;;  %v747_v33 = vpop.f32.mrb[1].mxu0 }
 0x103   :  { %v268_v34 = vpop.f32.mrb[2].mxu0 }
 0x104   :  { %v272_v35 = vmin.f32 %v825_v32, 0.0  ;;  %v748_v36 = vpop.f32.mrb[3].mxu0  ;;  %vm271_vm6 = vcmp.gt.f32.partialorder %v825_v32, 0.0 }
 0x106   :  { %v273_v37 = vmul.f32 1.442695, %v272_v35 }
 0x108   :  { %862 = vpow2.f32 %v273_v37 }
 0x112   :  { %v863_v38 = vpop.eup %862 }
 0x113   :  { %v690_v39 = vadd.f32 -1.0, %v863_v38 }
 0x115   :  { %v276_v40 = vsel %vm271_vm6, %v825_v32, %v690_v39 }
 0x116   :  { %v280_v41 = vmin.f32 %v276_v40, 0.0  ;;  %278 = vst.msk [vmem:[#allocation2] sm:$0xff] %vm277_vm5, %v276_v40  ;;  %vm279_vm7 = vcmp.gt.f32.partialorder %v276_v40, 0.0 }
 0x118   :  { %v281_v42 = vmul.f32 1.442695, %v280_v41 }
 0x11a   :  { %864 = vpow2.f32 %v281_v42 }
 0x11d   :  { %v286_v43 = vld [vmem:[#allocation2] sm:$0xff] }
 0x11e   :  { %760 = vmatmul.mubr.msk.f32.vlgmr.msra.gmra.mrb[0].mxu1 %vm23_vm3, %v286_v43 }
 0x11f   :  { %772 = vmatprep.mubr.msk.f32.mxu1 %vm894_vm0, %v895_v9  ;;  %809 = vmatpush3.bf16.msra.mxu1 %v808_v49 }
 0x120   :  { %810 = vmatprep.subr.bf16.mxu1 %v896_v24 }
 0x123   :  { %812 = vmatpush3.bf16.msra.mxu1 %v811_v56 }
 0x124   :  { %v865_v44 = vpop.eup %864  ;;  %770 = vmatprep.subr.mxu1 %v895_v9 }
 0x125   :  { %v691_v45 = vadd.f32 -1.0, %v865_v44 }
 0x127   :  { %v284_v46 = vsel %vm279_vm7, %v276_v40, %v691_v45  ;;  %771 = vmatpush3.msk.msra.mxu1 %vm295_vm4, %v699_v57 }
 0x128   :  { %285 = vst.msk [vmem:[#allocation3] sm:$0xff] %vm277_vm5, %v284_v46  ;;  %813 = vmatprep.subr.bf16.mxu1 %v896_v24 }
 0x1f1   :  { %v365_v50 = vpop.f32.mrb[0].mxu1 }
 0x1f2   :  { %v376_v51 = vmin.f32 %v365_v50, 0.0  ;;  %370 = vrot.lane.b32.xlu1 %v365_v50, %s897_s24  ;;  %v761_v52 = vpop.f32.mrb[1].mxu1  ;;  %vm375_vm8 = vcmp.gt.f32.partialorder %v365_v50, 0.0 }
 0x1f4   :  { %v377_v53 = vmul.f32 1.442695, %v376_v51 }
 0x1f6   :  { %866 = vpow2.f32 %v377_v53 }
 0x200   :  { %v867_v58 = vpop.eup %866 }
 0x201   :  { %v694_v59 = vadd.f32 -1.0, %v867_v58 }
 0x203   :  { %v380_v60 = vsel %vm375_vm8, %v365_v50, %v694_v59 }
 0x204   :  { %382 = vrot.lane.b32.xlu0 %v380_v60, %s897_s24  ;;  %s900_s24 = smov [#allocation4]  }
 0x205   :  { %s666_s25 = sshll.u32 %s900_s24, 4  ;;  %s667_s25 = int_to_ptr.vmem [resolvable:$true] %s666_s25 }
 0x206   :  { %s870_s3 = scalar_lea.vmem %s667_s25, 128  ;;  %p875_p1 = scmp.lt.s32.totalorder %s667_s25, %s667_s25 }
 0x207   :  { %p871_p0 = scmp.ne.s32.totalorder %s667_s25, %s870_s3  ;;  %p876_p2 = scmp.lt.s32.totalorder %s870_s3, %s870_s3 }
 0x209   :  { %p877_p3 = por %p876_p2, %p875_p1 }
 0x20b   :  { %p878_p4 = pnand %p877_p3, %p871_p0 }
 0x264   :  { %v371_v61 = vpop.permute.xlu1 %370 }
 0x265   :  { %374 = vst.msk [vmem:[#allocation2] sm:$0xff] %vm373_vm9, %v371_v61 }
 0x276   :  { %v383_v62 = vpop.permute.xlu0 %382 }
 0x277   :  { %385 = vst.msk [vmem:[#allocation3] sm:$0xff] %vm373_vm9, %v383_v62 }
 0x27e   :  { %v386_v63 = vld [vmem:[#allocation3] sm:$0xff] }
 0x27f   :  { %773 = vmatmul.mubr.msk.f32.vlgmr.msra.gmra.mrb[2].mxu1 %vm23_vm3, %v386_v63 }
 0x280   :  { %785 = vmatprep.mubr.msk.f32.mxu1 %vm894_vm0, %v895_v9  ;;  %815 = vmatpush3.bf16.msra.mxu1 %v814_v2 }
 0x281   :  { %816 = vmatprep.subr.bf16.mxu1 %v896_v24 }
 0x284   :  { %818 = vmatpush3.bf16.msra.mxu1 %v817_v10 }
 0x285   :  { %783 = vmatprep.subr.mxu1 %v895_v9 }
 0x288   :  { %784 = vmatpush3.msk.msra.mxu1 %vm295_vm4, %v707_v11 }
 0x289   :  { %819 = vmatprep.subr.bf16.mxu1 %v896_v24 }
 0x352   :  { %v465_v3 = vpop.f32.mrb[2].mxu1 }
 0x353   :  { %v476_v4 = vmin.f32 %v465_v3, 0.0  ;;  %470 = vrot.lane.b32.xlu1 %v465_v3, %s898_s9  ;;  %v774_v5 = vpop.f32.mrb[3].mxu1  ;;  %vm475_vm10 = vcmp.gt.f32.partialorder %v465_v3, 0.0 }
 0x355   :  { %v477_v6 = vmul.f32 1.442695, %v476_v4 }
 0x357   :  { %868 = vpow2.f32 %v477_v6 }
 0x361   :  { %v869_v12 = vpop.eup %868 }
 0x362   :  { %v702_v13 = vadd.f32 -1.0, %v869_v12 }
 0x364   :  { %v480_v14 = vsel %vm475_vm10, %v465_v3, %v702_v13 }
 0x365   :  { %482 = vrot.lane.b32.xlu0 %v480_v14, %s898_s9 }
 0x3c5   :  { %v471_v15 = vpop.permute.xlu1 %470 }
 0x3c6   :  { %474 = vst.msk [vmem:[#allocation2] sm:$0xff] %vm473_vm11, %v471_v15 }
 0x3d7   :  { %v483_v16 = vpop.permute.xlu0 %482 }
 0x3d8   :  { %485 = vst.msk [vmem:[#allocation3] sm:$0xff] %vm473_vm11, %v483_v16 }
 0x3df   :  { %v486_v17 = vld [vmem:[#allocation3] sm:$0xff] }
 0x3e0   :  { %786 = vmatmul.mubr.msk.f32.vlgmr.msra.gmra.mrb[4].mxu1 %vm23_vm3, %v486_v17 }
 0x3e1   :  { %798 = vmatprep.mubr.msk.f32.mxu1 %vm894_vm0, %v895_v9  ;;  %821 = vmatpush3.bf16.msra.mxu1 %v820_v20 }
 0x3e2   :  { %822 = vmatprep.subr.bf16.mxu1 %v896_v24 }
 0x3e5   :  { %824 = vmatpush3.bf16.msra.mxu1 %v823_v23 }
 0x3e6   :  { %796 = vmatprep.subr.mxu1 %v895_v9 }
 0x3e9   :  { %797 = vmatpush3.msk.msra.mxu1 %vm295_vm4, %v714_v25 }
 0x4b3   :  { %v565_v26 = vpop.f32.mrb[4].mxu1 }
 0x4b4   :  { %570 = vrot.lane.b32.xlu0 %v565_v26, %s899_s23  ;;  %v787_v24 = vpop.f32.mrb[5].mxu1 }
 0x526   :  { %v571_v27 = vpop.permute.xlu0 %570 }
 0x527   :  { %574 = vst.msk [vmem:[#allocation2] sm:$0xff] %vm573_vm12, %v571_v27 }
 0x52e   :  { %v575_v28 = vld [vmem:[#allocation2] sm:$0xff] }
 0x52f   :  { %799 = vmatmul.mubr.msk.f32.vlgmr.msra.gmra.mrb[6].mxu1 %vm23_vm3, %v575_v28 }
 0x602   :  { %v654_v9 = vpop.f32.mrb[6].mxu1 }
 0x603   :  { %659 = vst.msk [vmem:[#allocation4] sm:$0xff] %vm658_vm13, %v654_v9  ;;  %v800_v29 = vpop.f32.mrb[7].mxu1 }
 0x604   :  { %881 = shalt.err (!%p878_p4)
}
 0x605   :  { %s882_s28 = scalar_lea.hbm %s1072_s4, 128 }
 0x606   :  { %p883_p5 = scmp.ne.s32.totalorder %s1072_s4, %s882_s28  ;;  %p886_p6 = scmp.lt.u32.totalorder %s882_s28, %s1072_s4 }
 0x608   :  { %p888_p7 = pnand %p886_p6, %p883_p5 }
 0x60a   :  { %891 = shalt.err (!%p888_p7)
}
 0x60b   :  { %669 = dma.vmem_to_hbm [thread:$0]  %s667_s25, 128, %s1072_s4, [#allocation5]  }
 0x60c   :  { %892 = dma.done.wait [#allocation5], 128  }
 0x60d   :  { %893 = vsyncadd [#allocation5], 4294967168 }
 0x60e   :  { %673 = vsyncpa [#allocation5], 1 }

</bundles_post_ra>
